<compile_context>
chip_gen: v7x
topology: tpu7x:2x2x1
jax: 0.10.0
libtpu: 0.0.40
codegen_flags: <defaults>
</compile_context>

<pallas_src>
import jax
import jax.numpy as jnp
from jax.experimental import pallas as pl
from jax.experimental.pallas import tpu as pltpu


def _round_up(x, m):
    return ((x + m - 1) // m) * m


def mlp_kernel(x_ref, w1_ref, b1_ref, w2_ref, b2_ref, w3t_ref, b3_ref, o_ref):
    x = x_ref[...]                                        # (2, TM), batch on lanes

    # ---- Layer 1: Linear(2, 64) + ReLU on the VPU ---------------------------
    # Two broadcast-FMAs; the w1 columns / x rows are materialized once per tile.
    h1 = (w1_ref[:, 0:1] * x[0:1, :]
          + w1_ref[:, 1:2] * x[1:2, :]
          + b1_ref[...])                                  # (64, TM) f32
    h1 = jnp.maximum(h1, 0.0)

    # ---- Layer 2: Linear(64, 64) + ReLU on the MXU ---------------------------
    # w2 arrives in bf16 (or f32 if use_bf16=False); cast h1 to match and
    # accumulate in f32.  This is the only MXU matmul in the kernel.
    h2 = jnp.dot(w2_ref[...], h1.astype(w2_ref.dtype),
                 preferred_element_type=jnp.float32) + b2_ref[...]
    h2 = jnp.maximum(h2, 0.0)                             # (64, TM) f32

    # ---- Layer 3: Linear(64, 1) as VPU multiply + XLU sublane-reduce ---------
    # w3 is passed transposed as (64, 1) by the wrapper (no in-kernel relayout).
    out = jnp.sum(w3t_ref[...] * h2, axis=0, keepdims=True) + b3_ref[...]
    o_ref[...] = out.astype(o_ref.dtype)                  # (1, TM), lane-dense store


def mlp_forward(x, params, *, tile_m=8192, use_bf16=True):
    """x: [N, 2] float32.  params: torch-layout weights (out, in) + biases (out, 1)."""
    N, D_in = x.shape
    assert D_in == 2
    w1, b1 = params["w1"], params["b1"]   # (64, 2),  (64, 1)
    w2, b2 = params["w2"], params["b2"]   # (64, 64), (64, 1)
    w3, b3 = params["w3"], params["b3"]   # (1, 64),  (1, 1)

    # Lane-aligned batch tile; pad N up to a multiple of it inside the wrapper.
    # Default 8192 keeps the per-step footprint (~5.5 MiB incl. double-buffers
    # and the (64,TM) temporaries) well under the scoped-VMEM limit on every
    # generation (v5e 16 MiB / v6e 32 MiB / v7x 32 MiB defaults) while pushing
    # the ~0.35 us per-step pipeline overhead to a few percent.
    tile_m = max(128, _round_up(min(tile_m, _round_up(N, 128)), 128))
    n_pad = _round_up(N, tile_m)
    grid = (n_pad // tile_m,)

    # Transpose so batch maps to lanes; pad the batch with zeros (sliced off below).
    # TODO(synk): if the producer can emit x already as (2, N), this pad+transpose
    # disappears from the budget entirely.
    xt = jnp.pad(x.astype(jnp.float32).T, ((0, 0), (0, n_pad - N)))   # (2, n_pad)

    w2_k = w2.astype(jnp.bfloat16) if use_bf16 else w2
    w3t = w3.T                                            # (64, 1) — pre-transposed

    # Per-step VMEM footprint (bytes/elem): x dbuf 16 + out dbuf 8 +
    # h1 f32 256 + h1 bf16 copy 128 + h2 f32 256  ≈ 664 B/elem, + weights.
    per_elem_bytes = 664
    footprint = per_elem_bytes * tile_m + (64 * 1024)
    vmem_limit = int(min(max(footprint * 3 // 2, 32 * 1024 * 1024),
                         56 * 1024 * 1024))               # stay under v7x physical 64 MiB

    flops = 2 * n_pad * (2 * 64 + 64 * 64 + 64 * 1)
    bytes_accessed = 4 * (2 * n_pad + n_pad) + (2 if use_bf16 else 4) * 64 * 64 \
        + 4 * (64 * 2 + 64 + 64 + 64 + 1)

    out_t = pl.pallas_call(
        mlp_kernel,
        out_shape=jax.ShapeDtypeStruct((1, n_pad), jnp.float32),
        grid=grid,
        in_specs=[
            pl.BlockSpec((2, tile_m), lambda i: (0, i)),   # x tile (batch on lanes)
            pl.BlockSpec((64, 2), lambda i: (0, 0)),       # w1 (resident)
            pl.BlockSpec((64, 1), lambda i: (0, 0)),       # b1
            pl.BlockSpec((64, 64), lambda i: (0, 0)),      # w2 (bf16 or f32)
            pl.BlockSpec((64, 1), lambda i: (0, 0)),       # b2
            pl.BlockSpec((64, 1), lambda i: (0, 0)),       # w3^T (resident)
            pl.BlockSpec((1, 1), lambda i: (0, 0)),        # b3
        ],
        out_specs=pl.BlockSpec((1, tile_m), lambda i: (0, i)),
        compiler_params=pltpu.CompilerParams(
            dimension_semantics=("parallel",),             # shard batch across TCs
            vmem_limit_bytes=vmem_limit,
        ),
        cost_estimate=pl.CostEstimate(
            flops=flops, transcendentals=0, bytes_accessed=bytes_accessed),
    )(xt, w1, b1, w2_k, b2, w3t, b3)

    return out_t[0, :N].reshape(N, 1)


def init_params(key):
    """nn.Linear default init: U(-1/sqrt(fan_in), +1/sqrt(fan_in)).
    Weights stored in torch layout (out_features, in_features); biases (out, 1)."""
    def linear_init(k, fan_in, fan_out):
        kw, kb = jax.random.split(k)
        bound = float(fan_in) ** -0.5
        w = jax.random.uniform(kw, (fan_out, fan_in), jnp.float32, -bound, bound)
        b = jax.random.uniform(kb, (fan_out, 1), jnp.float32, -bound, bound)
        return w, b

    k1, k2, k3 = jax.random.split(key, 3)
    w1, b1 = linear_init(k1, 2, 64)
    w2, b2 = linear_init(k2, 64, 64)
    w3, b3 = linear_init(k3, 64, 1)
    return {"w1": w1, "b1": b1, "w2": w2, "b2": b2, "w3": w3, "b3": b3}


def mlp_reference(x, p):
    h1 = jnp.maximum(x @ p["w1"].T + p["b1"].T, 0.0)
    h2 = jnp.maximum(h1 @ p["w2"].T + p["b2"].T, 0.0)
    return h2 @ p["w3"].T + p["b3"].T


if __name__ == "__main__":
    key = jax.random.PRNGKey(0)
    k_x, k_p = jax.random.split(key)
    params = init_params(k_p)

    # Small shape consistent with Linear(2, ...): a batch of 2-D points.
    N = 8
    x = jax.random.normal(k_x, (N, 2), jnp.float32)
    ref = mlp_reference(x, params)

    # Exact-numerics path (f32 MXU) at tight tolerance.
    out_f32 = jax.block_until_ready(mlp_forward(x, params, use_bf16=False))
    assert out_f32.shape == (N, 1)
    assert jnp.allclose(out_f32, ref, atol=1e-5, rtol=1e-5), "mismatch (f32 path)"

    # Default fast path (bf16 layer-2 operands, f32 accumulation).
    out_bf16 = jax.block_until_ready(mlp_forward(x, params))
    assert jnp.allclose(out_bf16, ref, atol=5e-2, rtol=5e-2), "mismatch (bf16 path)"

    # Also exercise batch padding + multi-step grid.
    N2 = 300
    x2 = jax.random.normal(jax.random.PRNGKey(1), (N2, 2), jnp.float32)
    ref2 = mlp_reference(x2, params)
    out2 = jax.block_until_ready(mlp_forward(x2, params, tile_m=128))
    assert out2.shape == (N2, 1)
    assert jnp.allclose(out2, ref2, atol=5e-2, rtol=5e-2), "mismatch (padded batch)"

    print("KERNEL_OK")
</pallas_src>

<mosaic_0001>
module attributes {stable_mosaic.version = 11 : i64} {
  func.func @mlp_kernel(%arg0: i32, %arg1: memref<2x128xf32, #tpu.memory_space<vmem>>, %arg2: memref<64x2xf32, #tpu.memory_space<vmem>>, %arg3: memref<64x1xf32, #tpu.memory_space<vmem>>, %arg4: memref<64x64xf32, #tpu.memory_space<vmem>>, %arg5: memref<64x1xf32, #tpu.memory_space<vmem>>, %arg6: memref<64x1xf32, #tpu.memory_space<vmem>>, %arg7: memref<1x1xf32, #tpu.memory_space<vmem>>, %arg8: memref<1x128xf32, #tpu.memory_space<vmem>>) attributes {dimension_semantics = [#tpu.dimension_semantics<parallel>], iteration_bounds = array<i64: 1>, scalar_prefetch = 0 : i64, scratch_operands = 0 : i64, tpu.core_type = #tpu.core_type<tc>, window_params = [{transform_indices = @transform_0, window_bounds = array<i64: 2, 128>}, {pipeline_mode = #tpu.pipeline_mode<synchronous>, transform_indices = @transform_1, window_bounds = array<i64: 64, 2>}, {pipeline_mode = #tpu.pipeline_mode<synchronous>, transform_indices = @transform_2, window_bounds = array<i64: 64, 1>}, {pipeline_mode = #tpu.pipeline_mode<synchronous>, transform_indices = @transform_3, window_bounds = array<i64: 64, 64>}, {pipeline_mode = #tpu.pipeline_mode<synchronous>, transform_indices = @transform_4, window_bounds = array<i64: 64, 1>}, {pipeline_mode = #tpu.pipeline_mode<synchronous>, transform_indices = @transform_5, window_bounds = array<i64: 64, 1>}, {pipeline_mode = #tpu.pipeline_mode<synchronous>, transform_indices = @transform_6, window_bounds = array<i64: 1, 1>}, {transform_indices = @transform_7, window_bounds = array<i64: 1, 128>}]} {
    %c0 = arith.constant 0 : index
    %c0_0 = arith.constant 0 : index
    %0 = vector.load %arg1[%c0, %c0_0] : memref<2x128xf32, #tpu.memory_space<vmem>>, vector<2x128xf32>
    %c0_1 = arith.constant 0 : index
    %c0_2 = arith.constant 0 : index
    %1 = vector.load %arg2[%c0_1, %c0_2] : memref<64x2xf32, #tpu.memory_space<vmem>>, vector<64x1xf32>
    %2 = vector.extract_strided_slice %0 {offsets = [0, 0], sizes = [1, 128], strides = [1, 1]} : vector<2x128xf32> to vector<1x128xf32>
    %3 = vector.broadcast %1 : vector<64x1xf32> to vector<64x128xf32>
    %4 = vector.broadcast %2 : vector<1x128xf32> to vector<64x128xf32>
    %5 = arith.mulf %3, %4 : vector<64x128xf32>
    %c0_3 = arith.constant 0 : index
    %c1 = arith.constant 1 : index
    %6 = vector.load %arg2[%c0_3, %c1] : memref<64x2xf32, #tpu.memory_space<vmem>>, vector<64x1xf32>
    %7 = vector.extract_strided_slice %0 {offsets = [1, 0], sizes = [1, 128], strides = [1, 1]} : vector<2x128xf32> to vector<1x128xf32>
    %8 = vector.broadcast %6 : vector<64x1xf32> to vector<64x128xf32>
    %9 = vector.broadcast %7 : vector<1x128xf32> to vector<64x128xf32>
    %10 = arith.mulf %8, %9 : vector<64x128xf32>
    %11 = arith.addf %5, %10 : vector<64x128xf32>
    %c0_4 = arith.constant 0 : index
    %c0_5 = arith.constant 0 : index
    %12 = vector.load %arg3[%c0_4, %c0_5] : memref<64x1xf32, #tpu.memory_space<vmem>>, vector<64x1xf32>
    %13 = vector.broadcast %12 : vector<64x1xf32> to vector<64x128xf32>
    %14 = arith.addf %11, %13 : vector<64x128xf32>
    %cst = arith.constant 0.000000e+00 : f32
    %15 = vector.broadcast %cst : f32 to vector<64x128xf32>
    %16 = arith.maximumf %14, %15 : vector<64x128xf32>
    %c0_6 = arith.constant 0 : index
    %c0_7 = arith.constant 0 : index
    %17 = vector.load %arg4[%c0_6, %c0_7] : memref<64x64xf32, #tpu.memory_space<vmem>>, vector<64x64xf32>
    %cst_8 = arith.constant dense<0.000000e+00> : vector<64x128xf32>
    %18 = tpu.matmul %17, %16, %cst_8 {dimension_numbers = #tpu.dot_dimension_numbers<[1], [0], [0], [1], [0, 0, 1, 1], [], []>} : vector<64x64xf32>, vector<64x128xf32>, vector<64x128xf32> -> vector<64x128xf32>
    %c0_9 = arith.constant 0 : index
    %c0_10 = arith.constant 0 : index
    %19 = vector.load %arg5[%c0_9, %c0_10] : memref<64x1xf32, #tpu.memory_space<vmem>>, vector<64x1xf32>
    %20 = vector.broadcast %19 : vector<64x1xf32> to vector<64x128xf32>
    %21 = arith.addf %18, %20 : vector<64x128xf32>
    %cst_11 = arith.constant 0.000000e+00 : f32
    %22 = vector.broadcast %cst_11 : f32 to vector<64x128xf32>
    %23 = arith.maximumf %21, %22 : vector<64x128xf32>
    %c0_12 = arith.constant 0 : index
    %c0_13 = arith.constant 0 : index
    %24 = vector.load %arg6[%c0_12, %c0_13] : memref<64x1xf32, #tpu.memory_space<vmem>>, vector<64x1xf32>
    %25 = vector.broadcast %24 : vector<64x1xf32> to vector<64x128xf32>
    %26 = arith.mulf %25, %23 : vector<64x128xf32>
    %cst_14 = arith.constant dense<0.000000e+00> : vector<128xf32>
    %27 = vector.multi_reduction <add>, %26, %cst_14 [0] : vector<64x128xf32> to vector<128xf32>
    %28 = vector.shape_cast %27 : vector<128xf32> to vector<1x128xf32>
    %c0_15 = arith.constant 0 : index
    %c0_16 = arith.constant 0 : index
    %29 = vector.load %arg7[%c0_15, %c0_16] : memref<1x1xf32, #tpu.memory_space<vmem>>, vector<1x1xf32>
    %30 = vector.broadcast %29 : vector<1x1xf32> to vector<1x128xf32>
    %31 = arith.addf %28, %30 : vector<1x128xf32>
    %c0_17 = arith.constant 0 : index
    %c0_18 = arith.constant 0 : index
    %32 = vector.load %arg8[%c0_17, %c0_18] : memref<1x128xf32, #tpu.memory_space<vmem>>, vector<1x128xf32>
    tpu.vector_store %arg8[%c0_17, %c0_18], %31 {strides = array<i32>} : memref<1x128xf32, #tpu.memory_space<vmem>>, vector<1x128xf32>,
    return
  }
  func.func @transform_0(%arg0: i32) -> (i32, i32) {
    %c0_i32 = arith.constant 0 : i32
    %c0_i32_0 = arith.constant 0 : i32
    return %c0_i32, %arg0 : i32, i32
  }
  func.func @transform_1(%arg0: i32) -> (i32, i32) {
    %c0_i32 = arith.constant 0 : i32
    %c0_i32_0 = arith.constant 0 : i32
    %c0_i32_1 = arith.constant 0 : i32
    return %c0_i32, %c0_i32_0 : i32, i32
  }
  func.func @transform_2(%arg0: i32) -> (i32, i32) {
    %c0_i32 = arith.constant 0 : i32
    %c0_i32_0 = arith.constant 0 : i32
    %c0_i32_1 = arith.constant 0 : i32
    return %c0_i32, %c0_i32_0 : i32, i32
  }
  func.func @transform_3(%arg0: i32) -> (i32, i32) {
    %c0_i32 = arith.constant 0 : i32
    %c0_i32_0 = arith.constant 0 : i32
    %c0_i32_1 = arith.constant 0 : i32
    return %c0_i32, %c0_i32_0 : i32, i32
  }
  func.func @transform_4(%arg0: i32) -> (i32, i32) {
    %c0_i32 = arith.constant 0 : i32
    %c0_i32_0 = arith.constant 0 : i32
    %c0_i32_1 = arith.constant 0 : i32
    return %c0_i32, %c0_i32_0 : i32, i32
  }
  func.func @transform_5(%arg0: i32) -> (i32, i32) {
    %c0_i32 = arith.constant 0 : i32
    %c0_i32_0 = arith.constant 0 : i32
    %c0_i32_1 = arith.constant 0 : i32
    return %c0_i32, %c0_i32_0 : i32, i32
  }
  func.func @transform_6(%arg0: i32) -> (i32, i32) {
    %c0_i32 = arith.constant 0 : i32
    %c0_i32_0 = arith.constant 0 : i32
    %c0_i32_1 = arith.constant 0 : i32
    return %c0_i32, %c0_i32_0 : i32, i32
  }
  func.func @transform_7(%arg0: i32) -> (i32, i32) {
    %c0_i32 = arith.constant 0 : i32
    %c0_i32_0 = arith.constant 0 : i32
    return %c0_i32, %arg0 : i32, i32
  }
}

</mosaic_0001>

<bundles_post_ra>
// kernel: tpu_custom_call.1
= control target key start
LH: loop header
LB: loop body
LE: loop exit
PB: predicated region body
PF: predicated region fallthrough
CT: control target
= control target key end

     0   :  { %s805_s0 = inlined_call_operand.vmem [shape: f32[2,128], index: 0, kind: input, shape index: {}]   ;;  %s806_s1 = inlined_call_operand.vmem [shape: f32[64,2], index: 1, kind: input, shape index: {}]   ;;  %s807_s2 = inlined_call_operand.vmem [shape: f32[64,1], index: 2, kind: input, shape index: {}]   ;;  %s808_s3 = inlined_call_operand.vmem [shape: f32[64,64], index: 3, kind: input, shape index: {}]   ;;  %s809_s4 = inlined_call_operand.vmem [shape: f32[64,1], index: 4, kind: input, shape index: {}]   ;;  %s810_s5 = inlined_call_operand.vmem [shape: f32[64,1], index: 5, kind: input, shape index: {}]   ;;  %s811_s6 = inlined_call_operand.<no memory space> [shape: f32[1,1], index: 6, kind: input, shape index: {}]   ;;  %s812_s7 = inlined_call_operand.hbm [shape: f32[1,128], index: 7, kind: output, shape index: {}]  }
   0x1   :  { %v12_v0 = vstv %s811_s6 }
   0x2   :  { %13 = vst [vmem:[#allocation2] sm:$0x1] %v12_v0 }
   0x3   :  { %v32_v1 = vld [vmem:[%s806_s1 + $0x10] sm:$0xff]  ;;  %v30_v2 = vld [vmem:[%s806_s1] sm:$0xff]  ;;  %v608_v3 = vmov 1   ;;  %v31_v5 = vld [vmem:[%s806_s1 + $0x8] sm:$0xff]  ;;  %v609_v8 = vmov 0  }
   0x4   :  { %576 = vset.pattern.permute.xlu0 %v608_v3  ;;  %574 = vset.pattern.permute.xlu1 %v608_v3  ;;  %v34_v4 = vld [vmem:[%s806_s1 + $0x20] sm:$0xff]  ;;  %v36_v6 = vld [vmem:[%s806_s1 + $0x30] sm:$0xff]  ;;  %v33_v7 = vld [vmem:[%s806_s1 + $0x18] sm:$0xff] }
   0x5   :  { %99 = vperm.xlu0 %576, %v32_v1   ;;  %91 = vperm.xlu1 %574, %v30_v2  }
   0x9   :  { %107 = vperm.xlu0 %576, %v34_v4   ;;  %95 = vperm.xlu1 %574, %v31_v5  }
   0xd   :  { %115 = vperm.xlu0 %576, %v36_v6   ;;  %575 = vset.pattern.permute.xlu1 %v609_v8 }
   0xe   :  { %55 = vperm.xlu1 %575, %v33_v7  }
   0xf   :  { %14 = vsyncpa [#allocation4], 0  ;;  %v142_v9 = vld [vmem:[%s807_s2] sm:$0xff]  ;;  %v143_v10 = vld [vmem:[%s807_s2 + $0x8] sm:$0xff]  ;;  %vm262_vm0 = vcmask 523264   ;;  %v78_v40 = vlaneseq }
  0x10   :  { %v35_v11 = vld [vmem:[%s806_s1 + $0x28] sm:$0xff]  ;;  %v145_v12 = vld [vmem:[%s807_s2 + $0x18] sm:$0xff]  ;;  %v214_v14 = vld [vmem:[%s809_s4] sm:$0xff] }
  0x11   :  { %581 = vset.pattern.permute.xlu0 %v609_v8  ;;  %v147_v13 = vld [vmem:[%s807_s2 + $0x28] sm:$0xff]  ;;  %v144_v15 = vld [vmem:[%s807_s2 + $0x10] sm:$0xff]  ;;  %v400_v17 = vld [vmem:[%s810_s5] sm:$0xff]  ;;  %v758_v43 = vshrl.u32 %v78_v40, 7 }
  0x12   :  { %40 = vperm.xlu0 %581, %v30_v2   ;;  %577 = vset.pattern.permute.xlu1 %v608_v3  ;;  %v216_v16 = vld [vmem:[%s809_s4 + $0x10] sm:$0xff]  ;;  %v37_v18 = vld [vmem:[%s806_s1 + $0x38] sm:$0xff]  ;;  %v218_v19 = vld [vmem:[%s809_s4 + $0x20] sm:$0xff] }
  0x13   :  { %103 = vperm.xlu1 %577, %v33_v7   ;;  %v219_v20 = vld [vmem:[%s809_s4 + $0x28] sm:$0xff]  ;;  %v146_v21 = vld [vmem:[%s807_s2 + $0x20] sm:$0xff]  ;;  %v220_v22 = vld [vmem:[%s809_s4 + $0x30] sm:$0xff]  ;;  %v124_v46 = vsub.s32 1, %v758_v43  ;;  %v80_v47 = vsub.s32 0, %v758_v43 }
  0x14   :  { %v148_v23 = vld [vmem:[%s807_s2 + $0x30] sm:$0xff]  ;;  %v221_v24 = vld [vmem:[%s809_s4 + $0x38] sm:$0xff]  ;;  %v215_v27 = vld [vmem:[%s809_s4 + $0x8] sm:$0xff] }
  0x15   :  { %v149_v25 = vld [vmem:[%s807_s2 + $0x38] sm:$0xff]  ;;  %v406_v26 = vld [vmem:[%s810_s5 + $0x30] sm:$0xff]  ;;  %v469_v28 = vld [vmem:[#allocation2] sm:$0x1] }
  0x16   :  { %45 = vperm.xlu0 %581, %v31_v5   ;;  %v217_v29 = vld [vmem:[%s809_s4 + $0x18] sm:$0xff]  ;;  %v206_v30 = vld [vmem:[%s808_s3] sm:$0xff]  ;;  %v401_v32 = vld [vmem:[%s810_s5 + $0x8] sm:$0xff] }
  0x17   :  { %578 = vset.pattern.permute.xlu1 %v609_v8  ;;  %v210_v31 = vld [vmem:[%s808_s3 + $0x20] sm:$0xff]  ;;  %535 = vmatprep.mubr.msk.f32.mxu0 %vm262_vm0, %v206_v30  ;;  %v402_v33 = vld [vmem:[%s810_s5 + $0x10] sm:$0xff]  ;;  %v403_v34 = vld [vmem:[%s810_s5 + $0x18] sm:$0xff] }
  0x18   :  { %152 = vperm.xlu1 %578, %v142_v9   ;;  %541 = vmatprep.mubr.msk.f32.mxu1 %vm262_vm0, %v210_v31  ;;  %v404_v35 = vld [vmem:[%s810_s5 + $0x20] sm:$0xff]  ;;  %v405_v36 = vld [vmem:[%s810_s5 + $0x28] sm:$0xff]  ;;  %v407_v37 = vld [vmem:[%s810_s5 + $0x38] sm:$0xff] }
  0x19   :  { %v29_v48 = vld [vmem:[%s805_s0] sm:$0x3] }
  0x1a   :  { %50 = vperm.xlu0 %581, %v32_v1   ;;  %v125_v51 = vrot.slane %v29_v48, %v124_v46  ;;  %v81_v52 = vrot.slane %v29_v48, %v80_v47 }
  0x1c   :  { %60 = vperm.xlu1 %578, %v34_v4  }
  0x1e   :  { %157 = vperm.xlu0 %581, %v143_v10  }
  0x20   :  { %65 = vperm.xlu1 %578, %v35_v11  }
  0x22   :  { %167 = vperm.xlu0 %581, %v145_v12  }
  0x24   :  { %579 = vset.pattern.permute.xlu1 %v608_v3 }
  0x25   :  { %111 = vperm.xlu1 %579, %v35_v11  }
  0x26   :  { %177 = vperm.xlu0 %581, %v147_v13  }
  0x29   :  { %580 = vset.pattern.permute.xlu1 %v609_v8 }
  0x2a   :  { %224 = vperm.xlu0 %581, %v214_v14   ;;  %162 = vperm.xlu1 %580, %v144_v15  }
  0x2e   :  { %234 = vperm.xlu0 %581, %v216_v16   ;;  %70 = vperm.xlu1 %580, %v36_v6  }
  0x32   :  { %410 = vperm.xlu0 %581, %v400_v17   ;;  %75 = vperm.xlu1 %580, %v37_v18  }
  0x36   :  { %244 = vperm.xlu0 %581, %v218_v19   ;;  %582 = vset.pattern.permute.xlu1 %v608_v3 }
  0x37   :  { %119 = vperm.xlu1 %582, %v37_v18  }
  0x3a   :  { %249 = vperm.xlu0 %581, %v219_v20  }
  0x3b   :  { %583 = vset.pattern.permute.xlu1 %v609_v8 }
  0x3c   :  { %172 = vperm.xlu1 %583, %v146_v21  }
  0x3e   :  { %254 = vperm.xlu0 %581, %v220_v22  }
  0x40   :  { %182 = vperm.xlu1 %583, %v148_v23  }
  0x42   :  { %259 = vperm.xlu0 %581, %v221_v24  }
  0x44   :  { %187 = vperm.xlu1 %583, %v149_v25  }
  0x46   :  { %440 = vperm.xlu0 %581, %v406_v26  }
  0x48   :  { %229 = vperm.xlu1 %583, %v215_v27  }
  0x4a   :  { %472 = vperm.xlu0 %581, %v469_v28  }
  0x4c   :  { %239 = vperm.xlu1 %583, %v217_v29  }
  0x50   :  { %415 = vperm.xlu1 %583, %v401_v32  }
  0x54   :  { %420 = vperm.xlu1 %583, %v402_v33  }
  0x58   :  { %425 = vperm.xlu1 %583, %v403_v34  }
  0x5c   :  { %430 = vperm.xlu1 %583, %v404_v35  }
  0x60   :  { %435 = vperm.xlu1 %583, %v405_v36  }
  0x64   :  { %445 = vperm.xlu1 %583, %v407_v37  }
  0x84   :  { %v92_v38 = vpop.permute.xlu1 %91  ;;  %v100_v39 = vpop.permute.xlu0 %99 }
  0x85   :  { %v126_v56 = vmul.f32 %v125_v51, %v92_v38  ;;  %v128_v7 = vmul.f32 %v125_v51, %v100_v39 }
  0x88   :  { %v96_v41 = vpop.permute.xlu1 %95  ;;  %v108_v42 = vpop.permute.xlu0 %107 }
  0x89   :  { %v127_v59 = vmul.f32 %v125_v51, %v96_v41  ;;  %v130_v24 = vmul.f32 %v125_v51, %v108_v42 }
  0x8c   :  { %v116_v44 = vpop.permute.xlu0 %115 }
  0x8d   :  { %v56_v45 = vpop.permute.xlu1 %55  ;;  %v132_v34 = vmul.f32 %v125_v51, %v116_v44  ;;  %v207_v44 = vld [vmem:[%s808_s3 + $0x8] sm:$0xff] }
  0x8e   :  { %v85_v8 = vmul.f32 %v81_v52, %v56_v45 }
  0x91   :  { %v41_v49 = vpop.permute.xlu0 %40 }
  0x92   :  { %v104_v50 = vpop.permute.xlu1 %103  ;;  %v82_v54 = vmul.f32 %v81_v52, %v41_v49 }
  0x93   :  { %v129_v5 = vmul.f32 %v125_v51, %v104_v50 }
  0x94   :  { %v134_v60 = vadd.f32 %v126_v56, %v82_v54  ;;  %v212_v54 = vld [vmem:[%s808_s3 + $0x30] sm:$0xff]  ;;  %v213_v56 = vld [vmem:[%s808_s3 + $0x38] sm:$0xff] }
  0x95   :  { %v46_v53 = vpop.permute.xlu0 %45  ;;  %v137_v12 = vadd.f32 %v129_v5, %v85_v8 }
  0x96   :  { %v83_v57 = vmul.f32 %v81_v52, %v46_v53 }
  0x97   :  { %v153_v55 = vpop.permute.xlu1 %152 }
  0x98   :  { %v190_v62 = vadd.f32 %v153_v55, %v134_v60  ;;  %v135_v63 = vadd.f32 %v127_v59, %v83_v57  ;;  %v209_v55 = vld [vmem:[%s808_s3 + $0x18] sm:$0xff] }
  0x99   :  { %v51_v58 = vpop.permute.xlu0 %50 }
  0x9a   :  { %v198_v3 = vmax.f32 %v190_v62, 0.0  ;;  %v84_v9 = vmul.f32 %v81_v52, %v51_v58 }
  0x9b   :  { %v61_v61 = vpop.permute.xlu1 %60 }
  0x9c   :  { %v136_v14 = vadd.f32 %v128_v7, %v84_v9  ;;  %v86_v25 = vmul.f32 %v81_v52, %v61_v61 }
  0x9d   :  { %v158_v0 = vpop.permute.xlu0 %157 }
  0x9e   :  { %v191_v1 = vadd.f32 %v158_v0, %v135_v63  ;;  %v138_v30 = vadd.f32 %v130_v24, %v86_v25 }
  0x9f   :  { %v66_v2 = vpop.permute.xlu1 %65 }
  0xa0   :  { %v199_v4 = vmax.f32 %v191_v1, 0.0  ;;  %v87_v23 = vmul.f32 %v81_v52, %v66_v2 }
  0xa1   :  { %v168_v11 = vpop.permute.xlu0 %167 }
  0xa2   :  { %v547_v6 = vpack.c.bf16 %v199_v4, %v198_v3  ;;  %v193_v13 = vadd.f32 %v168_v11, %v137_v12 }
  0xa4   :  { %v112_v10 = vpop.permute.xlu1 %111  ;;  %548 = vmatprep.subr.bf16.mxu0 %v547_v6  ;;  %563 = vmatprep.subr.bf16.mxu1 %v547_v6  ;;  %v201_v17 = vmax.f32 %v193_v13, 0.0 }
  0xa5   :  { %550 = vmatpush3.bf16.msra.mxu0 %v547_v6  ;;  %567 = vmatpush3.bf16.msra.mxu1 %v547_v6  ;;  %v131_v22 = vmul.f32 %v125_v51, %v112_v10  ;;  %v178_v28 = vpop.permute.xlu0 %177 }
  0xa7   :  { %v139_v26 = vadd.f32 %v131_v22, %v87_v23 }
  0xa9   :  { %v163_v15 = vpop.permute.xlu1 %162  ;;  %v195_v29 = vadd.f32 %v178_v28, %v139_v26  ;;  %v225_v57 = vpop.permute.xlu0 %224 }
  0xaa   :  { %v192_v16 = vadd.f32 %v163_v15, %v136_v14 }
  0xab   :  { %v203_v35 = vmax.f32 %v195_v29, 0.0 }
  0xac   :  { %v200_v18 = vmax.f32 %v192_v16, 0.0 }
  0xad   :  { %v71_v19 = vpop.permute.xlu1 %70  ;;  %v235_v59 = vpop.permute.xlu0 %234 }
  0xae   :  { %v551_v20 = vpack.c.bf16 %v201_v17, %v200_v18  ;;  %v88_v32 = vmul.f32 %v81_v52, %v71_v19 }
  0xb0   :  { %552 = vmatprep.subr.bf16.mxu0 %v551_v20  ;;  %564 = vmatprep.subr.bf16.mxu1 %v551_v20  ;;  %v140_v41 = vadd.f32 %v132_v34, %v88_v32 }
  0xb1   :  { %v76_v21 = vpop.permute.xlu1 %75  ;;  %554 = vmatpush3.bf16.msra.mxu0 %v551_v20  ;;  %568 = vmatpush3.bf16.msra.mxu1 %v551_v20  ;;  %v411_v61 = vpop.permute.xlu0 %410 }
  0xb2   :  { %v89_v39 = vmul.f32 %v81_v52, %v76_v21  ;;  %v208_v52 = vld [vmem:[%s808_s3 + $0x10] sm:$0xff] }
  0xb5   :  { %v245_v63 = vpop.permute.xlu0 %244 }
  0xb6   :  { %v120_v27 = vpop.permute.xlu1 %119 }
  0xb7   :  { %v133_v36 = vmul.f32 %v125_v51, %v120_v27  ;;  %v211_v51 = vld [vmem:[%s808_s3 + $0x28] sm:$0xff]  ;;  %s610_s3 = smov [#allocation3]  }
  0xb8   :  { %s487_s2 = sshll.u32 %s610_s3, 4  ;;  %s488_s2 = int_to_ptr.vmem [resolvable:$true] %s487_s2 }
  0xb9   :  { %v141_v42 = vadd.f32 %v133_v36, %v89_v39  ;;  %v250_v1 = vpop.permute.xlu0 %249  ;;  %s584_s30 = scalar_lea.vmem %s488_s2, 16  ;;  %s588_s8 = scalar_lea.vmem %s488_s2, 32 }
  0xba   :  { %p585_p0 = scmp.ne.s32.totalorder %s488_s2, %s584_s30  ;;  %p589_p1 = scmp.lt.s32.totalorder %s488_s2, %s488_s2 }
  0xbb   :  { %v173_v31 = vpop.permute.xlu1 %172  ;;  %p590_p2 = scmp.lt.s32.totalorder %s588_s8, %s584_s30 }
  0xbc   :  { %v194_v33 = vadd.f32 %v173_v31, %v138_v30 }
  0xbd   :  { %v255_v9 = vpop.permute.xlu0 %254  ;;  %p591_p3 = por %p590_p2, %p589_p1 }
  0xbe   :  { %v202_v37 = vmax.f32 %v194_v33, 0.0 }
  0xbf   :  { %v183_v38 = vpop.permute.xlu1 %182  ;;  %p592_p4 = pnand %p591_p3, %p585_p0 }
  0xc0   :  { %v555_v40 = vpack.c.bf16 %v203_v35, %v202_v37  ;;  %v196_v45 = vadd.f32 %v183_v38, %v140_v41 }
  0xc1   :  { %v260_v29 = vpop.permute.xlu0 %259 }
  0xc2   :  { %556 = vmatprep.subr.bf16.mxu0 %v555_v40  ;;  %565 = vmatprep.subr.bf16.mxu1 %v555_v40  ;;  %v204_v49 = vmax.f32 %v196_v45, 0.0 }
  0xc3   :  { %v188_v46 = vpop.permute.xlu1 %187  ;;  %558 = vmatpush3.bf16.msra.mxu0 %v555_v40  ;;  %569 = vmatpush3.bf16.msra.mxu1 %v555_v40 }
  0xc4   :  { %v197_v48 = vadd.f32 %v188_v46, %v141_v42 }
  0xc5   :  { %v441_v41 = vpop.permute.xlu0 %440 }
  0xc6   :  { %v205_v50 = vmax.f32 %v197_v48, 0.0 }
  0xc7   :  { %v230_v58 = vpop.permute.xlu1 %229 }
  0xc8   :  { %v559_v53 = vpack.c.bf16 %v205_v50, %v204_v49 }
  0xca   :  { %560 = vmatprep.subr.bf16.mxu0 %v559_v53  ;;  %566 = vmatprep.subr.bf16.mxu1 %v559_v53 }
  0xcb   :  { %562 = vmatpush3.bf16.msra.mxu0 %v559_v53  ;;  %570 = vmatpush3.bf16.msra.mxu1 %v559_v53  ;;  %v240_v60 = vpop.permute.xlu1 %239 }
  0xce   :  { %536 = vmatmul.mubr.msk.f32.vlgmr.msra.gmra.mrb[0].mxu0 %vm262_vm0, %v207_v44  ;;  %542 = vmatmul.mubr.msk.f32.vlgmr.msra.gmra.mrb[0].mxu1 %vm262_vm0, %v211_v51 }
  0xcf   :  { %538 = vmatprep.mubr.msk.f32.mxu0 %vm262_vm0, %v208_v52  ;;  %544 = vmatprep.mubr.msk.f32.mxu1 %vm262_vm0, %v212_v54  ;;  %v416_v62 = vpop.permute.xlu1 %415  ;;  %v473_v54 = vpop.permute.xlu0 %472 }
  0xd2   :  { %539 = vmatmul.mubr.msk.f32.gmra.mrb[2].mxu0 %vm262_vm0, %v209_v55  ;;  %545 = vmatmul.mubr.msk.f32.gmra.mrb[2].mxu1 %vm262_vm0, %v213_v56  ;;  %v478_v56 = vrot.slane %v473_v54, %v80_v47 }
  0xd3   :  { %v421_v0 = vpop.permute.xlu1 %420 }
  0xd7   :  { %v426_v2 = vpop.permute.xlu1 %425 }
  0xdb   :  { %v431_v21 = vpop.permute.xlu1 %430 }
  0xdf   :  { %v436_v34 = vpop.permute.xlu1 %435 }
  0xe3   :  { %v446_v46 = vpop.permute.xlu1 %445 }
 0x1a1   :  { %v537_v3 = vpop.f32.mrb[0].mxu0  ;;  %v543_v4 = vpop.f32.mrb[0].mxu1 }
 0x1a2   :  { %v359_v5 = vadd.f32 %v537_v3, %v230_v58  ;;  %v353_v6 = vpop.f32.mrb[1].mxu0  ;;  %v373_v7 = vpop.f32.mrb[1].mxu1  ;;  %v379_v22 = vadd.f32 %v543_v4, %v250_v1 }
 0x1a3   :  { %v354_v8 = vadd.f32 %v353_v6, %v225_v57  ;;  %v374_v19 = vadd.f32 %v373_v7, %v245_v63 }
 0x1a4   :  { %v393_v10 = vmax.f32 %v359_v5, 0.0  ;;  %v397_v30 = vmax.f32 %v379_v22, 0.0 }
 0x1a5   :  { %v392_v11 = vmax.f32 %v354_v8, 0.0  ;;  %v540_v12 = vpop.f32.mrb[2].mxu0  ;;  %v546_v13 = vpop.f32.mrb[2].mxu1  ;;  %v396_v26 = vmax.f32 %v374_v19, 0.0 }
 0x1a6   :  { %v449_v14 = vmul.f32 %v416_v62, %v393_v10  ;;  %v369_v15 = vadd.f32 %v540_v12, %v240_v60  ;;  %v363_v16 = vpop.f32.mrb[3].mxu0  ;;  %v383_v17 = vpop.f32.mrb[3].mxu1  ;;  %v389_v32 = vadd.f32 %v546_v13, %v260_v29  ;;  %v453_v38 = vmul.f32 %v436_v34, %v397_v30 }
 0x1a7   :  { %v448_v18 = vmul.f32 %v411_v61, %v392_v11  ;;  %v364_v20 = vadd.f32 %v363_v16, %v235_v59  ;;  %v384_v28 = vadd.f32 %v383_v17, %v255_v9  ;;  %v452_v35 = vmul.f32 %v431_v21, %v396_v26 }
 0x1a8   :  { %v395_v24 = vmax.f32 %v369_v15, 0.0  ;;  %v399_v39 = vmax.f32 %v389_v32, 0.0 }
 0x1a9   :  { %v456_v23 = vadd.f32 %v449_v14, %v448_v18  ;;  %v394_v25 = vmax.f32 %v364_v20, 0.0  ;;  %v398_v37 = vmax.f32 %v384_v28, 0.0 }
 0x1aa   :  { %v451_v31 = vmul.f32 %v426_v2, %v395_v24  ;;  %v455_v48 = vmul.f32 %v446_v46, %v399_v39 }
 0x1ab   :  { %v450_v27 = vmul.f32 %v421_v0, %v394_v25  ;;  %v454_v45 = vmul.f32 %v441_v41, %v398_v37 }
 0x1ad   :  { %v457_v33 = vadd.f32 %v456_v23, %v450_v27 }
 0x1af   :  { %v458_v36 = vadd.f32 %v457_v33, %v451_v31 }
 0x1b1   :  { %v459_v40 = vadd.f32 %v458_v36, %v452_v35 }
 0x1b3   :  { %v460_v42 = vadd.f32 %v459_v40, %v453_v38 }
 0x1b5   :  { %v461_v49 = vadd.f32 %v460_v42, %v454_v45 }
 0x1b7   :  { %v462_v50 = vadd.f32 %v461_v49, %v455_v48 }
 0x1b9   :  { %v463_v53 = vrot.slane %v462_v50, 4 }
 0x1bb   :  { %v464_v44 = vadd.f32 %v463_v53, %v462_v50 }
 0x1bd   :  { %v465_v51 = vrot.slane %v464_v44, 2 }
 0x1bf   :  { %v466_v52 = vadd.f32 %v465_v51, %v464_v44 }
 0x1c1   :  { %v467_v55 = vrot.slane %v466_v52, 1 }
 0x1c3   :  { %v468_v57 = vadd.f32 %v467_v55, %v466_v52 }
 0x1c5   :  { %v479_v58 = vadd.f32 %v478_v56, %v468_v57 }
 0x1c7   :  { %480 = vst [vmem:[#allocation3] sm:$0x1] %v479_v58 }
 0x1c8   :  { %595 = shalt.err (!%p592_p4)
}
 0x1c9   :  { %s596_s4 = scalar_lea.hbm %s812_s7, 16 }
 0x1ca   :  { %p597_p5 = scmp.ne.s32.totalorder %s812_s7, %s596_s4  ;;  %p600_p6 = scmp.lt.u32.totalorder %s596_s4, %s812_s7 }
 0x1cc   :  { %p602_p7 = pnand %p600_p6, %p597_p5 }
 0x1ce   :  { %605 = shalt.err (!%p602_p7)
}
 0x1cf   :  { %490 = dma.vmem_to_hbm [thread:$0]  %s488_s2, 16, %s812_s7, [#allocation4]  }
 0x1d0   :  { %606 = dma.done.wait [#allocation4], 16  }
 0x1d1   :  { %607 = vsyncadd [#allocation4], 4294967280 }
 0x1d2   :  { %494 = vsyncpa [#allocation4], 1 }

</bundles_post_ra>
